<compile_context>
chip_gen: v7x
topology: tpu7x:2x2x1
jax: 0.10.0
libtpu: 0.0.40
codegen_flags: <defaults>
</compile_context>

<pallas_src>
import jax
import jax.numpy as jnp
from jax.experimental import pallas as pl
from jax.experimental.pallas import tpu as pltpu

_LANES = 128
_SUBLANES = 8


def _ce_partial_kernel(x_ref, y_ref, o_ref):
    # o_ref: (1, 8, 128) f32 partial-sum block, resident across the inner
    # ("arbitrary") reduction axis for this outer grid index.
    @pl.when(pl.program_id(1) == 0)
    def _init():
        o_ref[...] = jnp.zeros_like(o_ref)

    x = x_ref[...].astype(jnp.float32)   # upcast in-kernel (free VPU cast)
    y = y_ref[...].astype(jnp.float32)
    contrib = y * jnp.log(x + 1e-7)      # (br, 128): VPU mul + EUP log
    # Collapse only the sublane-block axis: (br,128)->(br/8,8,128)->(8,128).
    # Pure vreg adds; the final cross-lane reduce is done once in JAX.
    o_ref[...] += contrib.reshape(-1, _SUBLANES, _LANES).sum(axis=0)[None]


def _round_up(a, b):
    return (a + b - 1) // b * b


def one_hot_cross_entropy(x, y, *, block_rows=8192, num_partials=2):
    """x, y: (B, C). Returns scalar f32: 5 * (-mean(sum(y*log(x+1e-7), 1), 0))."""
    assert x.shape == y.shape and x.ndim == 2
    B, C = x.shape
    n = B * C

    rows = max(1, pl.cdiv(n, _LANES))
    # Only split into multiple parallel partials when there is enough work.
    n_par = num_partials if rows >= 2 * block_rows else 1
    rows_per_par = _round_up(pl.cdiv(rows, n_par), _SUBLANES)
    br = min(block_rows, rows_per_par)
    n_inner = pl.cdiv(rows_per_par, br)
    rows_per_par = n_inner * br
    total_rows = n_par * rows_per_par
    pad = total_rows * _LANES - n

    xf = x.reshape(-1)
    yf = y.reshape(-1)
    if pad:
        # Padding contributes exactly 0: y_pad = 0 (x_pad = 1 keeps log finite).
        xf = jnp.concatenate([xf, jnp.ones((pad,), xf.dtype)])
        yf = jnp.concatenate([yf, jnp.zeros((pad,), yf.dtype)])
    x2 = xf.reshape(total_rows, _LANES)
    y2 = yf.reshape(total_rows, _LANES)

    in_map = lambda p, i: (p * n_inner + i, 0)
    partials = pl.pallas_call(
        _ce_partial_kernel,
        out_shape=jax.ShapeDtypeStruct((n_par, _SUBLANES, _LANES), jnp.float32),
        grid_spec=pltpu.PrefetchScalarGridSpec(
            num_scalar_prefetch=0,
            grid=(n_par, n_inner),
            in_specs=[
                pl.BlockSpec((br, _LANES), in_map),
                pl.BlockSpec((br, _LANES), in_map),
            ],
            out_specs=pl.BlockSpec((1, _SUBLANES, _LANES), lambda p, i: (p, 0, 0)),
        ),
        compiler_params=pltpu.CompilerParams(
            dimension_semantics=("parallel", "arbitrary"),
            vmem_limit_bytes=32 << 20,
        ),
    )(x2, y2)

    # Tiny final combine + scale in plain JAX: mean(sum(., 1), 0) == sum(.) / B.
    return (-5.0 / B) * jnp.sum(partials)


if __name__ == "__main__":
    key = jax.random.PRNGKey(0)
    B, C = 8, 32  # small (batch, num_classes) consistent with the module

    kx, ky = jax.random.split(key)
    # x: probability-like inputs (softmax of random logits)
    logits = jax.random.normal(kx, (B, C), dtype=jnp.float32)
    x = jax.nn.softmax(logits, axis=1)
    # y: one-hot targets
    labels = jax.random.randint(ky, (B,), 0, C)
    y = jax.nn.one_hot(labels, C, dtype=jnp.float32)

    loss = one_hot_cross_entropy(x, y)
    jax.block_until_ready(loss)

    # Reference check in plain JAX (same math as the PyTorch module).
    ref = 5.0 * (-jnp.mean(jnp.sum(y * jnp.log(x + 1e-07), axis=1), axis=0))
    assert jnp.allclose(loss, ref, rtol=1e-5, atol=1e-5), (loss, ref)

    print("KERNEL_OK")
</pallas_src>

<mosaic_0001>
module attributes {stable_mosaic.version = 11 : i64} {
  func.func @_ce_partial_kernel(%arg0: i32, %arg1: i32, %arg2: memref<8x128xf32, #tpu.memory_space<vmem>>, %arg3: memref<8x128xf32, #tpu.memory_space<vmem>>, %arg4: memref<1x8x128xf32, #tpu.memory_space<vmem>>) attributes {dimension_semantics = [#tpu.dimension_semantics<parallel>, #tpu.dimension_semantics<arbitrary>], iteration_bounds = array<i64: 1, 1>, scalar_prefetch = 0 : i64, scratch_operands = 0 : i64, tpu.core_type = #tpu.core_type<tc>, window_params = [{transform_indices = @transform_0, window_bounds = array<i64: 8, 128>}, {transform_indices = @transform_1, window_bounds = array<i64: 8, 128>}, {transform_indices = @transform_2, window_bounds = array<i64: 1, 8, 128>}]} {
    %c0_i32 = arith.constant 0 : i32
    %0 = arith.cmpi eq, %arg1, %c0_i32 : i32
    %1 = arith.extui %0 : i1 to i32
    %c0_i32_0 = arith.constant 0 : i32
    %2 = arith.cmpi ne, %1, %c0_i32_0 : i32
    scf.if %2 {
      %cst_11 = arith.constant 0.000000e+00 : f32
      %15 = vector.broadcast %cst_11 : f32 to vector<1x8x128xf32>
      %c0_12 = arith.constant 0 : index
      %c0_13 = arith.constant 0 : index
      %c0_14 = arith.constant 0 : index
      %16 = vector.load %arg4[%c0_12, %c0_13, %c0_14] : memref<1x8x128xf32, #tpu.memory_space<vmem>>, vector<1x8x128xf32>
      tpu.vector_store %arg4[%c0_12, %c0_13, %c0_14], %15 {strides = array<i32>} : memref<1x8x128xf32, #tpu.memory_space<vmem>>, vector<1x8x128xf32>,
    } else {
    }
    %c0 = arith.constant 0 : index
    %c0_1 = arith.constant 0 : index
    %3 = vector.load %arg2[%c0, %c0_1] : memref<8x128xf32, #tpu.memory_space<vmem>>, vector<8x128xf32>
    %c0_2 = arith.constant 0 : index
    %c0_3 = arith.constant 0 : index
    %4 = vector.load %arg3[%c0_2, %c0_3] : memref<8x128xf32, #tpu.memory_space<vmem>>, vector<8x128xf32>
    %cst = arith.constant 1.000000e-07 : f32
    %5 = vector.broadcast %cst : f32 to vector<8x128xf32>
    %6 = arith.addf %3, %5 : vector<8x128xf32>
    %7 = math.log %6 : vector<8x128xf32>
    %8 = arith.mulf %4, %7 : vector<8x128xf32>
    %c0_4 = arith.constant 0 : index
    %c0_5 = arith.constant 0 : index
    %c0_6 = arith.constant 0 : index
    %9 = vector.load %arg4[%c0_4, %c0_5, %c0_6] : memref<1x8x128xf32, #tpu.memory_space<vmem>>, vector<1x8x128xf32>
    %10 = vector.shape_cast %8 : vector<8x128xf32> to vector<1x8x128xf32>
    %cst_7 = arith.constant dense<0.000000e+00> : vector<8x128xf32>
    %11 = vector.multi_reduction <add>, %10, %cst_7 [0] : vector<1x8x128xf32> to vector<8x128xf32>
    %12 = vector.shape_cast %11 : vector<8x128xf32> to vector<1x8x128xf32>
    %13 = arith.addf %9, %12 : vector<1x8x128xf32>
    %c0_8 = arith.constant 0 : index
    %c0_9 = arith.constant 0 : index
    %c0_10 = arith.constant 0 : index
    %14 = vector.load %arg4[%c0_8, %c0_9, %c0_10] : memref<1x8x128xf32, #tpu.memory_space<vmem>>, vector<1x8x128xf32>
    tpu.vector_store %arg4[%c0_8, %c0_9, %c0_10], %13 {strides = array<i32>} : memref<1x8x128xf32, #tpu.memory_space<vmem>>, vector<1x8x128xf32>,
    return
  }
  func.func @transform_0(%arg0: i32, %arg1: i32) -> (i32, i32) {
    %c1_i32 = arith.constant 1 : i32
    %0 = arith.muli %arg0, %c1_i32 : i32
    %1 = arith.addi %0, %arg1 : i32
    %c0_i32 = arith.constant 0 : i32
    %c0_i32_0 = arith.constant 0 : i32
    return %1, %c0_i32 : i32, i32
  }
  func.func @transform_1(%arg0: i32, %arg1: i32) -> (i32, i32) {
    %c1_i32 = arith.constant 1 : i32
    %0 = arith.muli %arg0, %c1_i32 : i32
    %1 = arith.addi %0, %arg1 : i32
    %c0_i32 = arith.constant 0 : i32
    %c0_i32_0 = arith.constant 0 : i32
    return %1, %c0_i32 : i32, i32
  }
  func.func @transform_2(%arg0: i32, %arg1: i32) -> (i32, i32, i32) {
    %c0_i32 = arith.constant 0 : i32
    %c0_i32_0 = arith.constant 0 : i32
    %c0_i32_1 = arith.constant 0 : i32
    return %arg0, %c0_i32, %c0_i32_0 : i32, i32, i32
  }
}

</mosaic_0001>

<bundles_post_ra>
// kernel: tpu_custom_call.1
= control target key start
LH: loop header
LB: loop body
LE: loop exit
PB: predicated region body
PF: predicated region fallthrough
CT: control target
= control target key end

     0   :  { %7 = vsyncpa [#allocation3], 0  ;;  %s207_s0 = inlined_call_operand.hbm [shape: f32[8,128], index: 0, kind: input, shape index: {}]   ;;  %s208_s1 = inlined_call_operand.hbm [shape: f32[8,128], index: 1, kind: input, shape index: {}]   ;;  %s209_s2 = inlined_call_operand.hbm [shape: f32[1,8,128], index: 2, kind: output, shape index: {}]  }
   0x1   :  { %8 = vsyncpa [#allocation6], 0 }
   0x2   :  { %9 = vsyncpa [#allocation4], 0  ;;  %s153_s9 = smov [#allocation2]   ;;  %s154_s11 = smov [#allocation5]  }
   0x3   :  { %s19_s10 = sshll.u32 %s153_s9, 4  ;;  %s32_s12 = sshll.u32 %s154_s11, 4  ;;  %s20_s10 = int_to_ptr.vmem [resolvable:$true] %s19_s10  ;;  %s33_s12 = int_to_ptr.vmem [resolvable:$true] %s32_s12 }
   0x4   :  { %s81_s15 = scalar_lea.hbm %s207_s0, 128 }
   0x5   :  { %p82_p0 = scmp.ne.s32.totalorder %s207_s0, %s81_s15  ;;  %p85_p1 = scmp.lt.u32.totalorder %s81_s15, %s207_s0 }
   0x7   :  { %p87_p2 = pnand %p85_p1, %p82_p0 }
   0x9   :  { %90 = shalt.err (!%p87_p2)
}
   0xa   :  { %s91_s20 = scalar_lea.vmem %s20_s10, 128  ;;  %p96_p4 = scmp.lt.s32.totalorder %s20_s10, %s20_s10 }
   0xb   :  { %p92_p3 = scmp.ne.s32.totalorder %s20_s10, %s91_s20  ;;  %p97_p5 = scmp.lt.s32.totalorder %s91_s20, %s91_s20 }
   0xd   :  { %p98_p6 = por %p97_p5, %p96_p4 }
   0xf   :  { %p99_p7 = pnand %p98_p6, %p92_p3 }
  0x11   :  { %102 = shalt.err (!%p99_p7)
}
  0x12   :  { %22 = dma.hbm_to_vmem [thread:$0]  %s207_s0, 128, %s20_s10, [#allocation3]  }
  0x13   :  { %s103_s25 = scalar_lea.hbm %s208_s1, 128 }
  0x14   :  { %p104_p8 = scmp.ne.s32.totalorder %s208_s1, %s103_s25  ;;  %p107_p9 = scmp.lt.u32.totalorder %s103_s25, %s208_s1 }
  0x16   :  { %p109_p10 = pnand %p107_p9, %p104_p8 }
  0x18   :  { %112 = shalt.err (!%p109_p10)
}
  0x19   :  { %s113_s30 = scalar_lea.vmem %s33_s12, 128  ;;  %p118_p12 = scmp.lt.s32.totalorder %s33_s12, %s33_s12 }
  0x1a   :  { %p114_p11 = scmp.ne.s32.totalorder %s33_s12, %s113_s30  ;;  %p119_p13 = scmp.lt.s32.totalorder %s113_s30, %s113_s30 }
  0x1c   :  { %p120_p0 = por %p119_p13, %p118_p12 }
  0x1e   :  { %p121_p1 = pnand %p120_p0, %p114_p11 }
  0x20   :  { %124 = shalt.err (!%p121_p1)
}
  0x21   :  { %35 = dma.hbm_to_vmem [thread:$0]  %s208_s1, 128, %s33_s12, [#allocation6]  }
  0x22   :  { %147 = dma.done.wait [#allocation3], 128  }
  0x23   :  { %148 = vsyncadd [#allocation3], 4294967168 }
  0x24   :  { %149 = dma.done.wait [#allocation6], 128  }
  0x25   :  { %150 = vsyncadd [#allocation6], 4294967168  ;;  %v49_v0 = vld [vmem:[#allocation2] sm:$0xff]  ;;  %v50_v3 = vld [vmem:[#allocation5] sm:$0xff]  ;;  %s155_s4 = smov [#allocation7]  }
  0x26   :  { %v51_v1 = vadd.f32 1e-07, %v49_v0  ;;  %s65_s5 = sshll.u32 %s155_s4, 4  ;;  %s66_s5 = int_to_ptr.vmem [resolvable:$true] %s65_s5 }
  0x27   :  { %s125_s6 = scalar_lea.vmem %s66_s5, 128  ;;  %p130_p3 = scmp.lt.s32.totalorder %s66_s5, %s66_s5 }
  0x28   :  { %79 = vlog2.f32 %v51_v1  ;;  %p126_p2 = scmp.ne.s32.totalorder %s66_s5, %s125_s6  ;;  %p131_p4 = scmp.lt.s32.totalorder %s125_s6, %s125_s6 }
  0x2a   :  { %p132_p5 = por %p131_p4, %p130_p3 }
  0x2c   :  { %p133_p6 = pnand %p132_p5, %p126_p2 }
  0x32   :  { %v80_v2 = vpop.eup %79 }
  0x33   :  { %v53_v4 = vmul.f32 0.6931472, %v80_v2 }
  0x35   :  { %v54_v5 = vmul.f32 %v53_v4, %v50_v3 }
  0x37   :  { %58 = vst [vmem:[#allocation7] sm:$0xff] %v54_v5 }
  0x38   :  { %136 = shalt.err (!%p133_p6)
}
  0x39   :  { %s137_s8 = scalar_lea.hbm %s209_s2, 128 }
  0x3a   :  { %p138_p7 = scmp.ne.s32.totalorder %s209_s2, %s137_s8  ;;  %p141_p8 = scmp.lt.u32.totalorder %s137_s8, %s209_s2 }
  0x3c   :  { %p143_p9 = pnand %p141_p8, %p138_p7 }
  0x3e   :  { %146 = shalt.err (!%p143_p9)
}
  0x3f   :  { %68 = dma.vmem_to_hbm [thread:$0]  %s66_s5, 128, %s209_s2, [#allocation4]  }
  0x40   :  { %151 = dma.done.wait [#allocation4], 128  }
  0x41   :  { %152 = vsyncadd [#allocation4], 4294967168 }
  0x42   :  { %72 = vsyncpa [#allocation3], 1 }
  0x43   :  { %73 = vsyncpa [#allocation6], 1 }
  0x44   :  { %74 = vsyncpa [#allocation4], 1 }

</bundles_post_ra>
